<compile_context>
chip_gen: v7x
topology: tpu7x:2x2x1
jax: 0.10.0
libtpu: 0.0.40
codegen_flags: <defaults>
</compile_context>

<pallas_src>
import functools

import jax
import jax.numpy as jnp
import numpy as np
from jax.experimental import pallas as pl
from jax.experimental.pallas import tpu as pltpu

LANE = 128
SUBLANE = 8


def _round_up(v, m):
    return (v + m - 1) // m * m


# --------------------------- fused MLP kernel ------------------------------- #
def _mlp_kernel(x_ref, w1_ref, b1_ref, w2_ref, b2_ref, w3_ref, b3_ref, o_ref):
    # (TM, IN) @ (IN, F1) -> relu -> @ (F1, F2) -> relu -> @ (F2, OUT_pad)
    h = jnp.dot(x_ref[...], w1_ref[...], preferred_element_type=jnp.float32) + b1_ref[...]
    h = jnp.maximum(h, 0.0)
    h = jnp.dot(h, w2_ref[...], preferred_element_type=jnp.float32) + b2_ref[...]
    h = jnp.maximum(h, 0.0)
    o_ref[...] = (
        jnp.dot(h, w3_ref[...], preferred_element_type=jnp.float32) + b3_ref[...]
    ).astype(o_ref.dtype)


def aud_model_pallas(x, params, *, out_size):
    """x: (N, IN) float32 -> (N, out_size) float32. Fully fused 3-layer MLP."""
    N, IN = x.shape
    F1 = params["w1_t"].shape[1]
    F2 = params["w2_t"].shape[1]
    OUTP = params["w3_t_pad"].shape[1]  # lane-padded output width (multiple of 128)

    # Adaptive batch tile: whole batch in one grid step for small N, otherwise
    # a large sublane-aligned tile to amortize per-step overhead.
    block_rows = min(_round_up(max(N, SUBLANE), SUBLANE), 256)
    Np = _round_up(max(N, block_rows), block_rows)
    x_p = x if Np == N else jnp.pad(x, ((0, Np - N), (0, 0)))

    cost = pl.CostEstimate(
        flops=2 * Np * (IN * F1 + F1 * F2 + F2 * OUTP),
        transcendentals=0,
        bytes_accessed=4 * (Np * IN + Np * OUTP
                            + IN * F1 + F1 + F1 * F2 + F2 + F2 * OUTP + OUTP),
    )

    out = pl.pallas_call(
        _mlp_kernel,
        out_shape=jax.ShapeDtypeStruct((Np, OUTP), jnp.float32),
        grid_spec=pltpu.PrefetchScalarGridSpec(
            num_scalar_prefetch=0,
            grid=(Np // block_rows,),
            in_specs=[
                pl.BlockSpec((block_rows, IN), lambda i: (i, 0)),   # x rows
                pl.BlockSpec((IN, F1), lambda i: (0, 0)),           # W1^T (resident)
                pl.BlockSpec((1, F1), lambda i: (0, 0)),            # b1
                pl.BlockSpec((F1, F2), lambda i: (0, 0)),           # W2^T (resident)
                pl.BlockSpec((1, F2), lambda i: (0, 0)),            # b2
                pl.BlockSpec((F2, OUTP), lambda i: (0, 0)),         # W3^T padded (resident)
                pl.BlockSpec((1, OUTP), lambda i: (0, 0)),          # b3 padded
            ],
            out_specs=pl.BlockSpec((block_rows, OUTP), lambda i: (i, 0)),
        ),
        compiler_params=pltpu.CompilerParams(
            # Batch rows are independent -> shardable across TCs on v7x.
            dimension_semantics=("parallel",),
        ),
        cost_estimate=cost,
    )(x_p, params["w1_t"], params["b1"], params["w2_t"], params["b2"],
      params["w3_t_pad"], params["b3_pad"])

    return out[:N, :out_size]


@functools.partial(jax.jit, static_argnames=("out_size",))
def aud_model_forward(x, params, *, out_size):
    return aud_model_pallas(x, params, out_size=out_size)


# ---------------------------- pure-JAX reference ---------------------------- #
def reference_forward(x, p):
    h = jnp.maximum(x @ p["w1_t"] + p["b1"][0], 0.0)
    h = jnp.maximum(h @ p["w2_t"] + p["b2"][0], 0.0)
    return h @ p["w3_t"] + p["b3"][0]


# ------------------------------- main ---------------------------------------- #
if __name__ == "__main__":
    # Small shapes consistent with Aud_Model(input_size, fc1_hidden, fc2_hidden, output_size).
    N = 16      # batch of audio feature vectors
    IN = 40     # input_size (e.g. MFCC feature dim)
    F1 = 128    # fc1_hidden
    F2 = 128    # fc2_hidden
    OUT = 64    # output_size

    key = jax.random.PRNGKey(0)
    k = jax.random.split(key, 7)

    def u(kk, shape, fan_in):
        b = 1.0 / np.sqrt(fan_in)
        return jax.random.uniform(kk, shape, jnp.float32, -b, b)

    # nn.Linear init (uniform +-1/sqrt(fan_in)); weights stored pre-transposed (in, out).
    w1_t = u(k[0], (IN, F1), IN)
    b1 = u(k[1], (1, F1), IN)
    w2_t = u(k[2], (F1, F2), F1)
    b2 = u(k[3], (1, F2), F1)
    w3_t = u(k[4], (F2, OUT), F2)
    b3 = u(k[5], (1, OUT), F2)

    OUTP = _round_up(OUT, LANE)   # lane-dense (unmasked vst) output slab
    params = {
        "w1_t": w1_t, "b1": b1,
        "w2_t": w2_t, "b2": b2,
        "w3_t_pad": jnp.pad(w3_t, ((0, 0), (0, OUTP - OUT))),
        "b3_pad": jnp.pad(b3, ((0, 0), (0, OUTP - OUT))),
    }

    x = jax.random.normal(k[6], (N, IN), jnp.float32)

    out = aud_model_forward(x, params, out_size=OUT)
    out = jax.block_until_ready(out)
    assert out.shape == (N, OUT), out.shape

    ref = jax.block_until_ready(reference_forward(
        x, {"w1_t": w1_t, "b1": b1, "w2_t": w2_t, "b2": b2, "w3_t": w3_t, "b3": b3}))
    np.testing.assert_allclose(np.asarray(out), np.asarray(ref), rtol=1e-5, atol=1e-5)

    print("KERNEL_OK")
</pallas_src>

<mosaic_0001>
module attributes {stable_mosaic.version = 11 : i64} {
  func.func @_mlp_kernel(%arg0: i32, %arg1: memref<16x40xf32, #tpu.memory_space<vmem>>, %arg2: memref<40x128xf32, #tpu.memory_space<vmem>>, %arg3: memref<1x128xf32, #tpu.memory_space<vmem>>, %arg4: memref<128x128xf32, #tpu.memory_space<vmem>>, %arg5: memref<1x128xf32, #tpu.memory_space<vmem>>, %arg6: memref<128x128xf32, #tpu.memory_space<vmem>>, %arg7: memref<1x128xf32, #tpu.memory_space<vmem>>, %arg8: memref<16x128xf32, #tpu.memory_space<vmem>>) attributes {dimension_semantics = [#tpu.dimension_semantics<parallel>], iteration_bounds = array<i64: 1>, scalar_prefetch = 0 : i64, scratch_operands = 0 : i64, tpu.core_type = #tpu.core_type<tc>, window_params = [{transform_indices = @transform_0, window_bounds = array<i64: 16, 40>}, {pipeline_mode = #tpu.pipeline_mode<synchronous>, transform_indices = @transform_1, window_bounds = array<i64: 40, 128>}, {pipeline_mode = #tpu.pipeline_mode<synchronous>, transform_indices = @transform_2, window_bounds = array<i64: 1, 128>}, {pipeline_mode = #tpu.pipeline_mode<synchronous>, transform_indices = @transform_3, window_bounds = array<i64: 128, 128>}, {pipeline_mode = #tpu.pipeline_mode<synchronous>, transform_indices = @transform_4, window_bounds = array<i64: 1, 128>}, {pipeline_mode = #tpu.pipeline_mode<synchronous>, transform_indices = @transform_5, window_bounds = array<i64: 128, 128>}, {pipeline_mode = #tpu.pipeline_mode<synchronous>, transform_indices = @transform_6, window_bounds = array<i64: 1, 128>}, {transform_indices = @transform_7, window_bounds = array<i64: 16, 128>}]} {
    %c0 = arith.constant 0 : index
    %c0_0 = arith.constant 0 : index
    %0 = vector.load %arg1[%c0, %c0_0] : memref<16x40xf32, #tpu.memory_space<vmem>>, vector<16x40xf32>
    %c0_1 = arith.constant 0 : index
    %c0_2 = arith.constant 0 : index
    %1 = vector.load %arg2[%c0_1, %c0_2] : memref<40x128xf32, #tpu.memory_space<vmem>>, vector<40x128xf32>
    %cst = arith.constant dense<0.000000e+00> : vector<16x128xf32>
    %2 = tpu.matmul %0, %1, %cst {dimension_numbers = #tpu.dot_dimension_numbers<[1], [0], [0], [1], [0, 0, 1, 1], [], []>} : vector<16x40xf32>, vector<40x128xf32>, vector<16x128xf32> -> vector<16x128xf32>
    %c0_3 = arith.constant 0 : index
    %c0_4 = arith.constant 0 : index
    %3 = vector.load %arg3[%c0_3, %c0_4] : memref<1x128xf32, #tpu.memory_space<vmem>>, vector<1x128xf32>
    %4 = vector.broadcast %3 : vector<1x128xf32> to vector<16x128xf32>
    %5 = arith.addf %2, %4 : vector<16x128xf32>
    %cst_5 = arith.constant 0.000000e+00 : f32
    %6 = vector.broadcast %cst_5 : f32 to vector<16x128xf32>
    %7 = arith.maximumf %5, %6 : vector<16x128xf32>
    %c0_6 = arith.constant 0 : index
    %c0_7 = arith.constant 0 : index
    %8 = vector.load %arg4[%c0_6, %c0_7] : memref<128x128xf32, #tpu.memory_space<vmem>>, vector<128x128xf32>
    %cst_8 = arith.constant dense<0.000000e+00> : vector<16x128xf32>
    %9 = tpu.matmul %7, %8, %cst_8 {dimension_numbers = #tpu.dot_dimension_numbers<[1], [0], [0], [1], [0, 0, 1, 1], [], []>} : vector<16x128xf32>, vector<128x128xf32>, vector<16x128xf32> -> vector<16x128xf32>
    %c0_9 = arith.constant 0 : index
    %c0_10 = arith.constant 0 : index
    %10 = vector.load %arg5[%c0_9, %c0_10] : memref<1x128xf32, #tpu.memory_space<vmem>>, vector<1x128xf32>
    %11 = vector.broadcast %10 : vector<1x128xf32> to vector<16x128xf32>
    %12 = arith.addf %9, %11 : vector<16x128xf32>
    %cst_11 = arith.constant 0.000000e+00 : f32
    %13 = vector.broadcast %cst_11 : f32 to vector<16x128xf32>
    %14 = arith.maximumf %12, %13 : vector<16x128xf32>
    %c0_12 = arith.constant 0 : index
    %c0_13 = arith.constant 0 : index
    %15 = vector.load %arg6[%c0_12, %c0_13] : memref<128x128xf32, #tpu.memory_space<vmem>>, vector<128x128xf32>
    %cst_14 = arith.constant dense<0.000000e+00> : vector<16x128xf32>
    %16 = tpu.matmul %14, %15, %cst_14 {dimension_numbers = #tpu.dot_dimension_numbers<[1], [0], [0], [1], [0, 0, 1, 1], [], []>} : vector<16x128xf32>, vector<128x128xf32>, vector<16x128xf32> -> vector<16x128xf32>
    %c0_15 = arith.constant 0 : index
    %c0_16 = arith.constant 0 : index
    %17 = vector.load %arg7[%c0_15, %c0_16] : memref<1x128xf32, #tpu.memory_space<vmem>>, vector<1x128xf32>
    %18 = vector.broadcast %17 : vector<1x128xf32> to vector<16x128xf32>
    %19 = arith.addf %16, %18 : vector<16x128xf32>
    %c0_17 = arith.constant 0 : index
    %c0_18 = arith.constant 0 : index
    %20 = vector.load %arg8[%c0_17, %c0_18] : memref<16x128xf32, #tpu.memory_space<vmem>>, vector<16x128xf32>
    tpu.vector_store %arg8[%c0_17, %c0_18], %19 {strides = array<i32>} : memref<16x128xf32, #tpu.memory_space<vmem>>, vector<16x128xf32>,
    return
  }
  func.func @transform_0(%arg0: i32) -> (i32, i32) {
    %c0_i32 = arith.constant 0 : i32
    %c0_i32_0 = arith.constant 0 : i32
    return %arg0, %c0_i32 : i32, i32
  }
  func.func @transform_1(%arg0: i32) -> (i32, i32) {
    %c0_i32 = arith.constant 0 : i32
    %c0_i32_0 = arith.constant 0 : i32
    %c0_i32_1 = arith.constant 0 : i32
    return %c0_i32, %c0_i32_0 : i32, i32
  }
  func.func @transform_2(%arg0: i32) -> (i32, i32) {
    %c0_i32 = arith.constant 0 : i32
    %c0_i32_0 = arith.constant 0 : i32
    %c0_i32_1 = arith.constant 0 : i32
    return %c0_i32, %c0_i32_0 : i32, i32
  }
  func.func @transform_3(%arg0: i32) -> (i32, i32) {
    %c0_i32 = arith.constant 0 : i32
    %c0_i32_0 = arith.constant 0 : i32
    %c0_i32_1 = arith.constant 0 : i32
    return %c0_i32, %c0_i32_0 : i32, i32
  }
  func.func @transform_4(%arg0: i32) -> (i32, i32) {
    %c0_i32 = arith.constant 0 : i32
    %c0_i32_0 = arith.constant 0 : i32
    %c0_i32_1 = arith.constant 0 : i32
    return %c0_i32, %c0_i32_0 : i32, i32
  }
  func.func @transform_5(%arg0: i32) -> (i32, i32) {
    %c0_i32 = arith.constant 0 : i32
    %c0_i32_0 = arith.constant 0 : i32
    %c0_i32_1 = arith.constant 0 : i32
    return %c0_i32, %c0_i32_0 : i32, i32
  }
  func.func @transform_6(%arg0: i32) -> (i32, i32) {
    %c0_i32 = arith.constant 0 : i32
    %c0_i32_0 = arith.constant 0 : i32
    %c0_i32_1 = arith.constant 0 : i32
    return %c0_i32, %c0_i32_0 : i32, i32
  }
  func.func @transform_7(%arg0: i32) -> (i32, i32) {
    %c0_i32 = arith.constant 0 : i32
    %c0_i32_0 = arith.constant 0 : i32
    return %arg0, %c0_i32 : i32, i32
  }
}

</mosaic_0001>

<bundles_post_ra>
// kernel: aud_model_forward.1
= control target key start
LH: loop header
LB: loop body
LE: loop exit
PB: predicated region body
PF: predicated region fallthrough
CT: control target
= control target key end

     0   :  { %12 = vsyncpa [#allocation3], 0  ;;  %s874_s0 = inlined_call_operand.hbm [shape: f32[16,40], index: 0, kind: input, shape index: {}]   ;;  %s875_s1 = inlined_call_operand.hbm [shape: f32[40,128], index: 1, kind: input, shape index: {}]   ;;  %s876_s2 = inlined_call_operand.vmem [shape: f32[1,128], index: 2, kind: input, shape index: {}]   ;;  %s877_s3 = inlined_call_operand.hbm [shape: f32[128,128], index: 3, kind: input, shape index: {}]   ;;  %s878_s4 = inlined_call_operand.vmem [shape: f32[1,128], index: 4, kind: input, shape index: {}]   ;;  %s879_s5 = inlined_call_operand.hbm [shape: f32[128,128], index: 5, kind: input, shape index: {}]   ;;  %s880_s6 = inlined_call_operand.vmem [shape: f32[1,128], index: 6, kind: input, shape index: {}]   ;;  %s881_s7 = inlined_call_operand.hbm [shape: f32[16,128], index: 7, kind: output, shape index: {}]  }
   0x1   :  { %13 = vsyncpa [#allocation6], 0 }
   0x2   :  { %14 = vsyncpa [#allocation9], 0 }
   0x3   :  { %15 = vsyncpa [#allocation4], 0  ;;  %s727_s24 = smov [#allocation5]   ;;  %s728_s26 = smov [#allocation2]  }
   0x4   :  { %s33_s25 = sshll.u32 %s727_s24, 4  ;;  %s21_s27 = sshll.u32 %s728_s26, 4  ;;  %s34_s25 = int_to_ptr.vmem [resolvable:$true] %s33_s25  ;;  %s774_s27 = int_to_ptr.vmem [resolvable:$true] %s21_s27 }
   0x5   :  { %s609_s30 = scalar_lea.hbm %s875_s1, 640 }
   0x6   :  { %p610_p0 = scmp.ne.s32.totalorder %s875_s1, %s609_s30  ;;  %p613_p1 = scmp.lt.u32.totalorder %s609_s30, %s875_s1 }
   0x8   :  { %p615_p2 = pnand %p613_p1, %p610_p0 }
   0xa   :  { %618 = shalt.err (!%p615_p2)
}
   0xb   :  { %s619_s12 = scalar_lea.vmem %s34_s25, 640  ;;  %p624_p4 = scmp.lt.s32.totalorder %s34_s25, %s34_s25 }
   0xc   :  { %p620_p3 = scmp.ne.s32.totalorder %s34_s25, %s619_s12  ;;  %p625_p5 = scmp.lt.s32.totalorder %s619_s12, %s619_s12 }
   0xe   :  { %p626_p6 = por %p625_p5, %p624_p4 }
  0x10   :  { %p627_p7 = pnand %p626_p6, %p620_p3 }
  0x12   :  { %630 = shalt.err (!%p627_p7)
}
  0x13   :  { %s729_s13 = smov 128   ;;  %s730_s14 = smov 8  }
  0x14   :  { %39 = dma.hbm_to_vmem [thread:$0]  %s875_s1, 640, %s34_s25, [#allocation6], %s729_s13, %s729_s13, %s730_s14  }
  0x15   :  { %s631_s19 = scalar_lea.hbm %s874_s0, 256 }
  0x16   :  { %p632_p8 = scmp.ne.s32.totalorder %s874_s0, %s631_s19  ;;  %p635_p9 = scmp.lt.u32.totalorder %s631_s19, %s874_s0 }
  0x18   :  { %p637_p10 = pnand %p635_p9, %p632_p8 }
  0x1a   :  { %640 = shalt.err (!%p637_p10)
}
  0x1b   :  { %s641_s24 = scalar_lea.vmem %s774_s27, 256  ;;  %p646_p12 = scmp.lt.s32.totalorder %s774_s27, %s774_s27 }
  0x1c   :  { %p642_p11 = scmp.ne.s32.totalorder %s774_s27, %s641_s24  ;;  %p647_p13 = scmp.lt.s32.totalorder %s641_s24, %s641_s24 }
  0x1e   :  { %p648_p0 = por %p647_p13, %p646_p12 }
  0x20   :  { %p649_p1 = pnand %p648_p0, %p642_p11 }
  0x22   :  { %652 = shalt.err (!%p649_p1)
}
  0x23   :  { %27 = dma.hbm_to_vmem [thread:$0]  %s874_s0, 256, %s774_s27, [#allocation3], %s729_s13, %s729_s13, %s730_s14  }
  0x24   :  { %s731_s26 = smov [#allocation7]   ;;  %s732_s29 = smov [#allocation8]  }
  0x25   :  { %s47_s28 = sshll.u32 %s731_s26, 4  ;;  %s61_s30 = sshll.u32 %s732_s29, 4  ;;  %s48_s28 = int_to_ptr.vmem [resolvable:$true] %s47_s28  ;;  %s811_s30 = int_to_ptr.vmem [resolvable:$true] %s61_s30 }
  0x26   :  { %s653_s10 = scalar_lea.hbm %s877_s3, 2048 }
  0x27   :  { %p654_p2 = scmp.ne.s32.totalorder %s877_s3, %s653_s10  ;;  %p657_p3 = scmp.lt.u32.totalorder %s653_s10, %s877_s3 }
  0x29   :  { %p659_p4 = pnand %p657_p3, %p654_p2 }
  0x2b   :  { %662 = shalt.err (!%p659_p4)
}
  0x2c   :  { %s663_s0 = scalar_lea.vmem %s48_s28, 2048  ;;  %p668_p6 = scmp.lt.s32.totalorder %s48_s28, %s48_s28 }
  0x2d   :  { %p664_p5 = scmp.ne.s32.totalorder %s48_s28, %s663_s0  ;;  %p669_p7 = scmp.lt.s32.totalorder %s663_s0, %s663_s0 }
  0x2f   :  { %p670_p8 = por %p669_p7, %p668_p6 }
  0x31   :  { %p671_p9 = pnand %p670_p8, %p664_p5 }
  0x33   :  { %674 = shalt.err (!%p671_p9)
}
  0x34   :  { %53 = dma.hbm_to_vmem [thread:$0]  %s877_s3, 2048, %s48_s28, [#allocation6], %s729_s13, %s729_s13, %s730_s14  }
  0x35   :  { %s675_s20 = scalar_lea.hbm %s879_s5, 2048 }
  0x36   :  { %p676_p10 = scmp.ne.s32.totalorder %s879_s5, %s675_s20  ;;  %p679_p11 = scmp.lt.u32.totalorder %s675_s20, %s879_s5 }
  0x38   :  { %p681_p12 = pnand %p679_p11, %p676_p10 }
  0x3a   :  { %684 = shalt.err (!%p681_p12)
}
  0x3b   :  { %s685_s1 = scalar_lea.vmem %s811_s30, 2048  ;;  %p690_p0 = scmp.lt.s32.totalorder %s811_s30, %s811_s30 }
  0x3c   :  { %p686_p13 = scmp.ne.s32.totalorder %s811_s30, %s685_s1  ;;  %p691_p1 = scmp.lt.s32.totalorder %s685_s1, %s685_s1 }
  0x3e   :  { %p692_p2 = por %p691_p1, %p690_p0 }
  0x40   :  { %p693_p3 = pnand %p692_p2, %p686_p13 }
  0x42   :  { %696 = shalt.err (!%p693_p3)
}
  0x43   :  { %67 = dma.hbm_to_vmem [thread:$0]  %s879_s5, 2048, %s811_s30, [#allocation9], %s729_s13, %s729_s13, %s730_s14  }
  0x44   :  { %719 = dma.done.wait [#allocation3], 256  }
  0x45   :  { %720 = vsyncadd [#allocation3], 4294967040 }
  0x46   :  { %721 = dma.done.wait [#allocation6], 2688  }
  0x47   :  { %722 = vsyncadd [#allocation6], 4294964608 }
  0x48   :  { %723 = dma.done.wait [#allocation9], 2048  }
  0x49   :  { %724 = vsyncadd [#allocation9], 4294965248  ;;  %vm96_vm0 = vcmask 326656   ;;  %v84_v0 = vld [vmem:[#allocation5] sm:$0xff]  ;;  %v85_v1 = vld [vmem:[#allocation5 + $0x8] sm:$0xff]  ;;  %s733_s8 = smov [#allocation10]  }
  0x4a   :  { %v86_v2 = vld [vmem:[#allocation5 + $0x10] sm:$0xff]  ;;  %v530_v3 = vpack.c.bf16 %v85_v1, %v84_v0  ;;  %v87_v4 = vld [vmem:[#allocation5 + $0x18] sm:$0xff]  ;;  %v180_v7 = vld [vmem:[#allocation7] sm:$0xff]  ;;  %s385_s9 = sshll.u32 %s733_s8, 4  ;;  %s386_s9 = int_to_ptr.vmem [resolvable:$true] %s385_s9 }
  0x4b   :  { %v82_v5 = vld [vmem:[#allocation2] sm:$0xff]  ;;  %v534_v6 = vpack.c.bf16 %v87_v4, %v86_v2  ;;  %v182_v10 = vld [vmem:[#allocation7 + $0x10] sm:$0xff]  ;;  %v183_v11 = vld [vmem:[#allocation7 + $0x18] sm:$0xff]  ;;  %p702_p5 = scmp.lt.s32.totalorder %s386_s9, %s386_s9 }
  0x4c   :  { %457 = vmatprep.mubr.msk.f32.mxu0 %vm96_vm0, %v82_v5  ;;  %v181_v8 = vld [vmem:[#allocation7 + $0x8] sm:$0xff]  ;;  %531 = vmatprep.subr.bf16.mxu0 %v530_v3  ;;  %v542_v12 = vpack.c.bf16 %v183_v11, %v182_v10  ;;  %v184_v13 = vld [vmem:[#allocation7 + $0x20] sm:$0xff]  ;;  %v88_v15 = vld [vmem:[#allocation5 + $0x20] sm:$0xff] }
  0x4d   :  { %v538_v9 = vpack.c.bf16 %v181_v8, %v180_v7  ;;  %533 = vmatpush3.bf16.msra.mxu0 %v530_v3  ;;  %v185_v14 = vld [vmem:[#allocation7 + $0x28] sm:$0xff]  ;;  %v186_v17 = vld [vmem:[#allocation7 + $0x30] sm:$0xff]  ;;  %v187_v18 = vld [vmem:[#allocation7 + $0x38] sm:$0xff] }
  0x4e   :  { %535 = vmatprep.subr.bf16.mxu0 %v534_v6  ;;  %v546_v16 = vpack.c.bf16 %v185_v14, %v184_v13  ;;  %v83_v19 = vld [vmem:[#allocation2 + $0x8] sm:$0xff]  ;;  %v550_v20 = vpack.c.bf16 %v187_v18, %v186_v17  ;;  %v188_v21 = vld [vmem:[#allocation7 + $0x40] sm:$0xff]  ;;  %v189_v22 = vld [vmem:[#allocation7 + $0x48] sm:$0xff] }
  0x4f   :  { %539 = vmatprep.subr.bf16.mxu1 %v538_v9  ;;  %v554_v23 = vpack.c.bf16 %v189_v22, %v188_v21  ;;  %v190_v24 = vld [vmem:[#allocation7 + $0x50] sm:$0xff]  ;;  %v191_v25 = vld [vmem:[#allocation7 + $0x58] sm:$0xff]  ;;  %v192_v27 = vld [vmem:[#allocation7 + $0x60] sm:$0xff] }
  0x50   :  { %541 = vmatpush3.bf16.msra.mxu1 %v538_v9  ;;  %v558_v26 = vpack.c.bf16 %v191_v25, %v190_v24  ;;  %v193_v28 = vld [vmem:[#allocation7 + $0x68] sm:$0xff]  ;;  %v194_v30 = vld [vmem:[#allocation7 + $0x70] sm:$0xff]  ;;  %v195_v31 = vld [vmem:[#allocation7 + $0x78] sm:$0xff] }
  0x51   :  { %543 = vmatprep.subr.bf16.mxu1 %v542_v12  ;;  %537 = vmatpush3.bf16.msra.mxu0 %v534_v6  ;;  %v562_v29 = vpack.c.bf16 %v193_v28, %v192_v27  ;;  %v566_v32 = vpack.c.bf16 %v195_v31, %v194_v30  ;;  %v280_v33 = vld [vmem:[#allocation8] sm:$0xff]  ;;  %v281_v34 = vld [vmem:[#allocation8 + $0x8] sm:$0xff]  ;;  %v282_v35 = vld [vmem:[#allocation8 + $0x10] sm:$0xff] }
  0x52   :  { %455 = vmatprep.subr.mxu0 %v88_v15  ;;  %v570_v36 = vpack.c.bf16 %v281_v34, %v280_v33  ;;  %v283_v37 = vld [vmem:[#allocation8 + $0x18] sm:$0xff]  ;;  %v284_v39 = vld [vmem:[#allocation8 + $0x20] sm:$0xff]  ;;  %v285_v40 = vld [vmem:[#allocation8 + $0x28] sm:$0xff] }
  0x53   :  { %v574_v38 = vpack.c.bf16 %v283_v37, %v282_v35  ;;  %v578_v41 = vpack.c.bf16 %v285_v40, %v284_v39  ;;  %v286_v42 = vld [vmem:[#allocation8 + $0x30] sm:$0xff]  ;;  %v287_v43 = vld [vmem:[#allocation8 + $0x38] sm:$0xff]  ;;  %v288_v45 = vld [vmem:[#allocation8 + $0x40] sm:$0xff] }
  0x54   :  { %545 = vmatpush3.bf16.msra.mxu1 %v542_v12  ;;  %v582_v44 = vpack.c.bf16 %v287_v43, %v286_v42  ;;  %v289_v46 = vld [vmem:[#allocation8 + $0x48] sm:$0xff]  ;;  %v290_v48 = vld [vmem:[#allocation8 + $0x50] sm:$0xff]  ;;  %v291_v49 = vld [vmem:[#allocation8 + $0x58] sm:$0xff] }
  0x55   :  { %547 = vmatprep.subr.bf16.mxu1 %v546_v16  ;;  %456 = vmatpush3.msra.mxu0 %v88_v15  ;;  %v586_v47 = vpack.c.bf16 %v289_v46, %v288_v45  ;;  %v590_v50 = vpack.c.bf16 %v291_v49, %v290_v48  ;;  %v292_v51 = vld [vmem:[#allocation8 + $0x60] sm:$0xff]  ;;  %v293_v52 = vld [vmem:[#allocation8 + $0x68] sm:$0xff]  ;;  %v294_v61 = vld [vmem:[#allocation8 + $0x70] sm:$0xff] }
  0x56   :  { %458 = vmatmul.mubr.msk.f32.vlgmr.msra.gmra.mrb[0].mxu0 %vm96_vm0, %v83_v19  ;;  %571 = vmatprep.subr.bf16.mxu0 %v570_v36  ;;  %v594_v53 = vpack.c.bf16 %v293_v52, %v292_v51  ;;  %v399_v54 = vld [vmem:[%s876_s2] ss:$0 sm:$0xff]  ;;  %v295_v62 = vld [vmem:[#allocation8 + $0x78] sm:$0xff] }
  0x57   :  { %573 = vmatpush3.bf16.msra.mxu0 %v570_v36  ;;  %v598_v63 = vpack.c.bf16 %v295_v62, %v294_v61  ;;  %v402_v0 = vld [vmem:[%s878_s4] ss:$0 sm:$0xff]  ;;  %s697_s4 = scalar_lea.vmem %s386_s9, 256 }
  0x58   :  { %549 = vmatpush3.bf16.msra.mxu1 %v546_v16  ;;  %575 = vmatprep.subr.bf16.mxu0 %v574_v38  ;;  %v403_v7 = vld [vmem:[%s880_s6] ss:$0 sm:$0xff]  ;;  %p698_p4 = scmp.ne.s32.totalorder %s386_s9, %s697_s4  ;;  %p703_p6 = scmp.lt.s32.totalorder %s697_s4, %s697_s4 }
  0x59   :  { %551 = vmatprep.subr.bf16.mxu1 %v550_v20 }
  0x5a   :  { %p704_p7 = por %p703_p6, %p702_p5 }
  0x5b   :  { %577 = vmatpush3.bf16.msra.mxu0 %v574_v38 }
  0x5c   :  { %553 = vmatpush3.bf16.msra.mxu1 %v550_v20  ;;  %579 = vmatprep.subr.bf16.mxu0 %v578_v41  ;;  %p705_p8 = pnand %p704_p7, %p698_p4 }
  0x5d   :  { %555 = vmatprep.subr.bf16.mxu1 %v554_v23 }
  0x5f   :  { %581 = vmatpush3.bf16.msra.mxu0 %v578_v41 }
  0x60   :  { %557 = vmatpush3.bf16.msra.mxu1 %v554_v23  ;;  %583 = vmatprep.subr.bf16.mxu0 %v582_v44 }
  0x61   :  { %559 = vmatprep.subr.bf16.mxu1 %v558_v26 }
  0x63   :  { %585 = vmatpush3.bf16.msra.mxu0 %v582_v44 }
  0x64   :  { %561 = vmatpush3.bf16.msra.mxu1 %v558_v26  ;;  %587 = vmatprep.subr.bf16.mxu0 %v586_v47 }
  0x65   :  { %563 = vmatprep.subr.bf16.mxu1 %v562_v29 }
  0x67   :  { %589 = vmatpush3.bf16.msra.mxu0 %v586_v47 }
  0x68   :  { %565 = vmatpush3.bf16.msra.mxu1 %v562_v29  ;;  %591 = vmatprep.subr.bf16.mxu0 %v590_v50 }
  0x69   :  { %567 = vmatprep.subr.bf16.mxu1 %v566_v32 }
  0x6b   :  { %593 = vmatpush3.bf16.msra.mxu0 %v590_v50 }
  0x6c   :  { %569 = vmatpush3.bf16.msra.mxu1 %v566_v32  ;;  %595 = vmatprep.subr.bf16.mxu0 %v594_v53 }
  0x6f   :  { %597 = vmatpush3.bf16.msra.mxu0 %v594_v53 }
  0x70   :  { %599 = vmatprep.subr.bf16.mxu0 %v598_v63 }
  0x73   :  { %601 = vmatpush3.bf16.msra.mxu0 %v598_v63 }
 0x129   :  { %v459_v55 = vpop.f32.mrb[0].mxu0 }
 0x12a   :  { %v175_v56 = vadd.f32 %v459_v55, %v399_v54  ;;  %v169_v57 = vpop.f32.mrb[1].mxu0 }
 0x12b   :  { %v170_v58 = vadd.f32 %v399_v54, %v169_v57 }
 0x12c   :  { %v179_v60 = vmax.f32 %v175_v56, 0.0 }
 0x12d   :  { %v178_v59 = vmax.f32 %v170_v58, 0.0 }
 0x12f   :  { %492 = vmatprep.mubr.f32.mxu1 %v178_v59 }
 0x130   :  { %493 = vmatmul.mubr.f32.vlgmr.msra.gmra.mrb[0].mxu1 %v179_v60 }
 0x203   :  { %v494_v1 = vpop.f32.mrb[0].mxu1 }
 0x204   :  { %v275_v2 = vadd.f32 %v494_v1, %v402_v0  ;;  %v269_v3 = vpop.f32.mrb[1].mxu1 }
 0x205   :  { %v270_v4 = vadd.f32 %v402_v0, %v269_v3 }
 0x206   :  { %v279_v6 = vmax.f32 %v275_v2, 0.0 }
 0x207   :  { %v278_v5 = vmax.f32 %v270_v4, 0.0 }
 0x209   :  { %527 = vmatprep.mubr.f32.mxu0 %v278_v5 }
 0x20a   :  { %528 = vmatmul.mubr.f32.vlgmr.msra.gmra.mrb[2].mxu0 %v279_v6 }
 0x2dd   :  { %v529_v8 = vpop.f32.mrb[2].mxu0 }
 0x2de   :  { %v375_v9 = vadd.f32 %v529_v8, %v403_v7  ;;  %v369_v10 = vpop.f32.mrb[3].mxu0 }
 0x2df   :  { %v370_v11 = vadd.f32 %v403_v7, %v369_v10 }
 0x2e0   :  { %379 = vst [vmem:[#allocation10 + $0x8] sm:$0xff] %v375_v9 }
 0x2e1   :  { %378 = vst [vmem:[#allocation10] sm:$0xff] %v370_v11 }
 0x2e2   :  { %708 = shalt.err (!%p705_p8)
}
 0x2e3   :  { %s709_s6 = scalar_lea.hbm %s881_s7, 256 }
 0x2e4   :  { %p710_p9 = scmp.ne.s32.totalorder %s881_s7, %s709_s6  ;;  %p713_p10 = scmp.lt.u32.totalorder %s709_s6, %s881_s7 }
 0x2e6   :  { %p715_p11 = pnand %p713_p10, %p710_p9 }
 0x2e8   :  { %718 = shalt.err (!%p715_p11)
}
 0x2e9   :  { %391 = dma.vmem_to_hbm [thread:$0]  %s386_s9, 256, %s881_s7, [#allocation4], %s729_s13, %s729_s13, %s730_s14  }
 0x2ea   :  { %725 = dma.done.wait [#allocation4], 256  }
 0x2eb   :  { %726 = vsyncadd [#allocation4], 4294967040 }
 0x2ec   :  { %395 = vsyncpa [#allocation3], 1 }
 0x2ed   :  { %396 = vsyncpa [#allocation6], 1 }
 0x2ee   :  { %397 = vsyncpa [#allocation9], 1 }
 0x2ef   :  { %398 = vsyncpa [#allocation4], 1 }

</bundles_post_ra>
